<compile_context>
chip_gen: v7x
topology: tpu7x:2x2x1
jax: 0.10.0
libtpu: 0.0.40
codegen_flags: <defaults>
</compile_context>

<pallas_src>
import numpy as np
import jax
import jax.numpy as jnp
from jax.experimental import pallas as pl
from jax.experimental.pallas import tpu as pltpu

_DEFAULT_BLOCK_BYTES = 2 * 1024 * 1024   # ~2 MiB blocks: 2 in + 2 out buffers = 8 MiB,
                                         # fits every generation's scoped VMEM default.
_MAX_COL_TILE = 512                      # column (lane-dim) tile for wide misaligned last dims


def _identity_kernel(x_ref, o_ref):
    # Whole-tile copy: full-lane vld -> vst (masked only on partial edge blocks).
    o_ref[...] = x_ref[...]


def _round_down_to(v, m):
    return max(m, (v // m) * m)


def _tiled_copy_2d(mat, row_tile, col_tile):
    rows, cols = mat.shape
    grid = (pl.cdiv(rows, row_tile), pl.cdiv(cols, col_tile))
    nbytes = mat.size * np.dtype(mat.dtype).itemsize
    return pl.pallas_call(
        _identity_kernel,
        out_shape=jax.ShapeDtypeStruct((rows, cols), mat.dtype),
        grid=grid,
        in_specs=[pl.BlockSpec((row_tile, col_tile), lambda i, j: (i, j))],
        out_specs=pl.BlockSpec((row_tile, col_tile), lambda i, j: (i, j)),
        # Alias the (single) input to the output: no second full-size HBM array,
        # and an XLA-donated input is written in place.
        input_output_aliases={0: 0},
        cost_estimate=pl.CostEstimate(
            flops=0, transcendentals=0, bytes_accessed=2 * nbytes),
        compiler_params=pltpu.CompilerParams(
            dimension_semantics=("parallel", "parallel"),
            vmem_limit_bytes=32 * 1024 * 1024),
    )(mat)


def identity_forward_zero_copy(x):
    """True nn.Identity: return the input itself (0 bytes of HBM traffic).

    This is the recommended production path — the Pallas kernel below exists to
    exercise the forward pass as an explicit TPU kernel / fresh output buffer."""
    return x


def identity_forward(x, *, block_bytes=_DEFAULT_BLOCK_BYTES):
    """Pallas Identity: returns an array equal to x (same shape, dtype, values)."""
    orig_shape = x.shape
    n = x.size
    if n == 0:
        # Empty input: nothing to copy, no grid to build.
        return x

    itemsize = np.dtype(x.dtype).itemsize

    if n % 128 == 0:
        # Lane-aligned collapse (common NN case): no padding needed, pick the widest
        # lane dim in {512, 256, 128} that divides the element count.
        cols = 512 if n % 512 == 0 else (256 if n % 256 == 0 else 128)
        rows = n // cols
        col_tile = cols                      # multiple of 128 -> unmasked full-lane vst
    else:
        # Misaligned total: keep the original trailing dim as the lane dim.
        cols = orig_shape[-1] if x.ndim >= 1 else 1
        rows = n // cols
        # Full-extent column block (always legal) for narrow dims; 512-wide
        # (multiple of 128) tiles with a masked edge block for wide dims.
        col_tile = cols if cols <= _MAX_COL_TILE else _MAX_COL_TILE

    # Row tile targeting ~block_bytes per block, multiple of 8 sublanes.
    row_tile = _round_down_to(block_bytes // (col_tile * itemsize), 8)
    if rows <= row_tile:
        row_tile = rows                      # single full-extent row block

    mat = x.reshape(rows, cols)              # contiguous collapse: a bitcast, no data movement
    out = _tiled_copy_2d(mat, row_tile, col_tile)
    return out.reshape(orig_shape)


if __name__ == "__main__":
    key = jax.random.PRNGKey(0)

    # 1) Small input from the module spec: single full-extent block, lane-aligned collapse.
    x1 = jax.random.normal(key, (2, 4, 16, 16), jnp.float32)
    out1 = jax.block_until_ready(jax.jit(identity_forward)(x1))
    assert out1.shape == x1.shape and out1.dtype == x1.dtype, (out1.shape, out1.dtype)
    np.testing.assert_array_equal(np.asarray(out1), np.asarray(x1))

    # 2) Misaligned total (not a multiple of 128): exercises the no-pad path with a
    #    multi-step row grid and a masked partial edge block (small block_bytes to
    #    force several grid steps at a small test size).
    x2 = jax.random.normal(jax.random.PRNGKey(1), (3, 5, 70, 129), jnp.float32)
    out2 = jax.block_until_ready(
        jax.jit(lambda a: identity_forward(a, block_bytes=64 * 1024))(x2))
    np.testing.assert_array_equal(np.asarray(out2), np.asarray(x2))

    # 3) Lane-aligned multi-block path (grid > 1 along rows).
    x3 = jax.random.normal(jax.random.PRNGKey(2), (16, 8, 32, 32), jnp.float32)
    out3 = jax.block_until_ready(
        jax.jit(lambda a: identity_forward(a, block_bytes=64 * 1024))(x3))
    np.testing.assert_array_equal(np.asarray(out3), np.asarray(x3))

    # 4) Wide misaligned last dim: 2-D grid with a masked partial column block.
    x4 = jax.random.normal(jax.random.PRNGKey(3), (7, 700), jnp.float32)
    out4 = jax.block_until_ready(jax.jit(identity_forward)(x4))
    np.testing.assert_array_equal(np.asarray(out4), np.asarray(x4))

    # 5) Empty input guard (no kernel launched) and the zero-copy production path.
    x5 = jnp.zeros((0, 4), jnp.float32)
    out5 = jax.block_until_ready(jax.jit(identity_forward)(x5))
    assert out5.shape == x5.shape and out5.dtype == x5.dtype
    np.testing.assert_array_equal(np.asarray(identity_forward_zero_copy(x1)),
                                  np.asarray(x1))

    print("KERNEL_OK")
</pallas_src>

<mosaic_0001>
module attributes {stable_mosaic.version = 11 : i64} {
  func.func @_identity_kernel(%arg0: i32, %arg1: i32, %arg2: memref<4x512xf32, #tpu.memory_space<vmem>>, %arg3: memref<4x512xf32, #tpu.memory_space<vmem>>) attributes {dimension_semantics = [#tpu.dimension_semantics<parallel>, #tpu.dimension_semantics<parallel>], iteration_bounds = array<i64: 1, 1>, scalar_prefetch = 0 : i64, scratch_operands = 0 : i64, tpu.core_type = #tpu.core_type<tc>, window_params = [{transform_indices = @transform_0, window_bounds = array<i64: 4, 512>}, {transform_indices = @transform_1, window_bounds = array<i64: 4, 512>}]} {
    %c0 = arith.constant 0 : index
    %c0_0 = arith.constant 0 : index
    %0 = vector.load %arg2[%c0, %c0_0] : memref<4x512xf32, #tpu.memory_space<vmem>>, vector<4x512xf32>
    %c0_1 = arith.constant 0 : index
    %c0_2 = arith.constant 0 : index
    %1 = vector.load %arg3[%c0_1, %c0_2] : memref<4x512xf32, #tpu.memory_space<vmem>>, vector<4x512xf32>
    tpu.vector_store %arg3[%c0_1, %c0_2], %0 {strides = array<i32>} : memref<4x512xf32, #tpu.memory_space<vmem>>, vector<4x512xf32>,
    return
  }
  func.func @transform_0(%arg0: i32, %arg1: i32) -> (i32, i32) {
    %c0_i32 = arith.constant 0 : i32
    return %arg0, %arg1 : i32, i32
  }
  func.func @transform_1(%arg0: i32, %arg1: i32) -> (i32, i32) {
    %c0_i32 = arith.constant 0 : i32
    return %arg0, %arg1 : i32, i32
  }
}

</mosaic_0001>

<bundles_post_ra>
// kernel: identity_forward.1
= control target key start
LH: loop header
LB: loop body
LE: loop exit
PB: predicated region body
PF: predicated region fallthrough
CT: control target
= control target key end

     0   :  { %s38_s0 = inlined_call_operand.vmem [shape: f32[4,512], index: 0, kind: input, shape index: {}, may-alias: {0,1}]   ;;  %s39_s1 = inlined_call_operand.vmem [shape: f32[4,512], index: 1, kind: output, shape index: {}, may-alias: {0,1}]  }
   0x1   :  { %v8_v0 = vld [vmem:[%s38_s0] sm:$0xff]  ;;  %v9_v1 = vld [vmem:[%s38_s0 + $0x8] sm:$0xff] }
   0x2   :  { %10 = vst [vmem:[%s39_s1] sm:$0xff] %v8_v0  ;;  %11 = vst [vmem:[%s39_s1 + $0x8] sm:$0xff] %v9_v1 }

</bundles_post_ra>
